<compile_context>
chip_gen: v7x
topology: tpu7x:2x2x1
jax: 0.10.0
libtpu: 0.0.40
codegen_flags: <defaults>
</compile_context>

<pallas_src>
import jax
import jax.numpy as jnp
from jax.experimental import pallas as pl
from jax.experimental.pallas import tpu as pltpu

LANE = 128
NEG_SLOPE = 0.2
VMEM_LIMIT = 32 * 1024 * 1024  # safe on v5e/v6e (128 MiB) and v7x (64 MiB phys)


def _round_up(x, m):
    return (x + m - 1) // m * m


# ---------------- Pallas kernels (hot path) ----------------

def _conv_lrelu_kernel(p_ref, w_ref, o_ref):
    # (TM, Kp) bf16 @ (Kp, TN) bf16 -> f32 on the MXU; LeakyReLU(0.2) on the
    # f32 accumulator (v5e has no bf16 VPU); store bf16 (halves writeback).
    acc = jnp.dot(p_ref[...], w_ref[...], preferred_element_type=jnp.float32)
    o_ref[...] = jnp.where(acc > 0, acc, NEG_SLOPE * acc).astype(o_ref.dtype)


def _final_conv_mean_kernel(inv_n_ref, p_ref, w_ref, o_ref, acc_ref):
    # Final 4x4 valid conv (as matmul) fused with the batch-mean reduction,
    # tiled along M with a resident f32 accumulator. Padded rows are zero so
    # they do not perturb the sum; mean = sum * (1/N) with 1/N from SMEM.
    m = pl.program_id(0)

    @pl.when(m == 0)
    def _():
        acc_ref[...] = jnp.zeros_like(acc_ref)

    part = jnp.dot(p_ref[...], w_ref[...], preferred_element_type=jnp.float32)
    acc_ref[...] += jnp.sum(part, axis=0, keepdims=True)

    @pl.when(m == pl.num_programs(0) - 1)
    def _():
        o_ref[...] = acc_ref[...] * inv_n_ref[0]


# ---------------- pallas_call wrappers ----------------

def _pick_tm(m, k_pad, tn):
    """>=2 grid steps (v7x megacore), multiple of 16 (bf16 packing), VMEM-gated."""
    half = _round_up(max(pl.cdiv(m, 2), 1), 16)
    # double-buffered bf16 patch tile + bf16 out tile, per row of the tile
    per_row = 2 * (2 * k_pad + 2 * tn)
    budget = 12 * 1024 * 1024
    cap = max(16, (budget // per_row) // 16 * 16)
    return int(max(16, min(half, cap, 1024)))


def _conv_lrelu_matmul(p, wm, cout_pad):
    """p: (M, Kp) bf16, wm: (Kp, cout_pad) bf16 -> (M_pad, cout_pad) bf16."""
    m, kp = p.shape
    tn = 256 if cout_pad % 256 == 0 else 128          # fill 256-wide MXU when possible
    tm = _pick_tm(m, kp, tn)
    m_pad = _round_up(m, tm)
    if m_pad != m:
        p = jnp.pad(p, ((0, m_pad - m), (0, 0)))
    grid = (m_pad // tm, cout_pad // tn)
    flops = 2 * m_pad * kp * cout_pad
    bytes_accessed = 2 * (m_pad * kp + kp * cout_pad + m_pad * cout_pad)
    return pl.pallas_call(
        _conv_lrelu_kernel,
        out_shape=jax.ShapeDtypeStruct((m_pad, cout_pad), jnp.bfloat16),
        grid=grid,
        in_specs=[
            pl.BlockSpec((tm, kp), lambda i, j: (i, 0)),    # patch rows: tiled along M
            pl.BlockSpec((kp, tn), lambda i, j: (0, j)),    # weight: tiled along cout
        ],
        out_specs=pl.BlockSpec((tm, tn), lambda i, j: (i, j)),
        compiler_params=pltpu.CompilerParams(
            dimension_semantics=("parallel", "parallel"),   # megacore on v7x
            vmem_limit_bytes=VMEM_LIMIT),
        cost_estimate=pl.CostEstimate(flops=flops, transcendentals=0,
                                      bytes_accessed=bytes_accessed),
    )(p, wm)


def _final_conv_mean(p, wm, inv_n):
    """p: (N, Kp) bf16, wm: (Kp, 128) bf16, inv_n: (1,) f32 -> (1, 128) f32."""
    m, kp = p.shape
    tm = min(512, _round_up(m, 16))
    m_pad = _round_up(m, tm)
    if m_pad != m:
        p = jnp.pad(p, ((0, m_pad - m), (0, 0)))
    grid = (m_pad // tm,)
    flops = 2 * m_pad * kp * LANE
    bytes_accessed = 2 * (m_pad * kp + kp * LANE) + 4 * LANE
    return pl.pallas_call(
        _final_conv_mean_kernel,
        out_shape=jax.ShapeDtypeStruct((1, LANE), jnp.float32),
        grid=grid,
        in_specs=[
            pl.BlockSpec(memory_space=pltpu.MemorySpace.SMEM),  # 1/N scalar
            pl.BlockSpec((tm, kp), lambda i: (i, 0)),
            pl.BlockSpec((kp, LANE), lambda i: (0, 0)),
        ],
        out_specs=pl.BlockSpec((1, LANE), lambda i: (0, 0)),
        scratch_shapes=[pltpu.VMEM((1, LANE), jnp.float32)],
        compiler_params=pltpu.CompilerParams(
            dimension_semantics=("arbitrary",),                 # reduction axis
            vmem_limit_bytes=VMEM_LIMIT),
        cost_estimate=pl.CostEstimate(flops=flops, transcendentals=0,
                                      bytes_accessed=bytes_accessed),
    )(inv_n, p, wm)


# ---------------- JAX glue: NHWC im2col + layer wiring (all bf16) ----------------

def _im2col_nhwc(x, kh, kw, stride, pad):
    """x: (N, H, W, C) -> patches (N*OH*OW, KH*KW*C); K order = (i*kw+j)*C + c."""
    n, h, w, c = x.shape
    xp = jnp.pad(x, ((0, 0), (pad, pad), (pad, pad), (0, 0)))
    hp, wp = h + 2 * pad, w + 2 * pad
    oh = (hp - kh) // stride + 1
    ow = (wp - kw) // stride + 1
    cols = []
    for i in range(kh):
        for j in range(kw):
            cols.append(xp[:, i:i + stride * oh:stride, j:j + stride * ow:stride, :])
    p = jnp.stack(cols, axis=3)                            # (N, OH, OW, kh*kw, C)
    p = p.reshape(n * oh * ow, kh * kw * c)
    return p, oh, ow


def _weight_matrix(w, k_pad, cout_pad):
    """PyTorch (Cout, Cin, KH, KW) -> (k_pad, cout_pad) bf16, zero-padded."""
    cout, cin, kh, kw = w.shape
    wm = jnp.transpose(w, (2, 3, 1, 0)).reshape(kh * kw * cin, cout)
    wm = jnp.pad(wm, ((0, k_pad - kh * kw * cin), (0, cout_pad - cout)))
    return wm.astype(jnp.bfloat16)


def _conv_lrelu(x_nhwc, w, stride, pad):
    cout, cin, kh, kw = w.shape
    n = x_nhwc.shape[0]
    p, oh, ow = _im2col_nhwc(x_nhwc, kh, kw, stride, pad)  # already bf16
    k = kh * kw * cin
    k_pad = _round_up(k, LANE)
    if k_pad != k:
        p = jnp.pad(p, ((0, 0), (0, k_pad - k)))
    cout_pad = _round_up(cout, LANE)
    wm = _weight_matrix(w, k_pad, cout_pad)
    out = _conv_lrelu_matmul(p, wm, cout_pad)              # (M_pad, cout_pad) bf16
    m = n * oh * ow
    # TODO(synk): this compaction slice re-reads the padded output; an in-kernel
    # im2col / whole-net fusion would consume the padded lane layout directly.
    return out[:m, :cout].reshape(n, oh, ow, cout)         # NHWC bf16 feeds next layer


def init_params(isize, nc, ndf, key):
    """Same layer stack as D(isize, nc, ndf); deterministic N(0, 0.02) init."""
    params = []
    k, key = jax.random.split(key)
    params.append(0.02 * jax.random.normal(k, (ndf, nc, 4, 4), jnp.float32))
    csize, cndf = isize // 2, ndf
    while csize > 4:
        k, key = jax.random.split(key)
        params.append(0.02 * jax.random.normal(k, (cndf * 2, cndf, 4, 4), jnp.float32))
        cndf *= 2
        csize //= 2
    k, key = jax.random.split(key)
    params.append(0.02 * jax.random.normal(k, (1, cndf, 4, 4), jnp.float32))
    return params


def d_forward(x, params):
    # x: NCHW (PyTorch layout). Cast to bf16 FIRST (halves glue traffic), then
    # one transpose to NHWC; stay channels-last for the rest of the network.
    h = jnp.transpose(x.astype(jnp.bfloat16), (0, 2, 3, 1))
    for w in params[:-1]:
        h = _conv_lrelu(h, w, stride=2, pad=1)             # conv(4,2,1)+LeakyReLU(0.2)
    wf = params[-1]
    cout, cin, kh, kw = wf.shape
    n = h.shape[0]
    p, _, _ = _im2col_nhwc(h, kh, kw, stride=1, pad=0)     # (N, 16*cin), OH=OW=1
    k = kh * kw * cin
    k_pad = _round_up(k, LANE)
    if k_pad != k:
        p = jnp.pad(p, ((0, 0), (0, k_pad - k)))
    wm = _weight_matrix(wf, k_pad, LANE)
    inv_n = jnp.full((1,), 1.0 / n, jnp.float32)
    out = _final_conv_mean(p, wm, inv_n)                   # (1, 128) f32 batch mean
    return out[0, :cout]                                   # == output.mean(0).view(1)


# ---------------- reference (same bf16 operand precision, f32 accumulate) ----

def _ref_forward(x, params):
    h = x
    for w in params[:-1]:
        h = jax.lax.conv_general_dilated(
            h.astype(jnp.bfloat16), w.astype(jnp.bfloat16), (2, 2), ((1, 1), (1, 1)),
            dimension_numbers=("NCHW", "OIHW", "NCHW"),
            preferred_element_type=jnp.float32)
        h = jnp.where(h > 0, h, NEG_SLOPE * h)
    h = jax.lax.conv_general_dilated(
        h.astype(jnp.bfloat16), params[-1].astype(jnp.bfloat16), (1, 1), ((0, 0), (0, 0)),
        dimension_numbers=("NCHW", "OIHW", "NCHW"),
        preferred_element_type=jnp.float32)
    return jnp.mean(h, axis=0).reshape(1)


if __name__ == "__main__":
    isize, nc, ndf = 16, 4, 8          # layers: 4->8 (s2), 8->16 (s2), 16->1 (final)
    batch = 2
    key = jax.random.PRNGKey(0)
    kx, kp = jax.random.split(key)
    x = jax.random.normal(kx, (batch, nc, isize, isize), jnp.float32)
    params = init_params(isize, nc, ndf, kp)

    fwd = jax.jit(d_forward)
    out = jax.block_until_ready(fwd(x, params))
    ref = jax.block_until_ready(_ref_forward(x, params))

    assert out.shape == (1,), out.shape
    assert jnp.allclose(out, ref, atol=2e-3, rtol=2e-2), (out, ref)
    print("KERNEL_OK")
</pallas_src>

<mosaic_0001>
module attributes {stable_mosaic.version = 11 : i64} {
  func.func @_conv_lrelu_kernel(%arg0: i32, %arg1: i32, %arg2: memref<64x128xbf16, #tpu.memory_space<vmem>>, %arg3: memref<128x128xbf16, #tpu.memory_space<vmem>>, %arg4: memref<64x128xbf16, #tpu.memory_space<vmem>>) attributes {dimension_semantics = [#tpu.dimension_semantics<parallel>, #tpu.dimension_semantics<parallel>], iteration_bounds = array<i64: 2, 1>, scalar_prefetch = 0 : i64, scratch_operands = 0 : i64, tpu.core_type = #tpu.core_type<tc>, window_params = [{transform_indices = @transform_0, window_bounds = array<i64: 64, 128>}, {transform_indices = @transform_1, window_bounds = array<i64: 128, 128>}, {transform_indices = @transform_2, window_bounds = array<i64: 64, 128>}]} {
    %c0 = arith.constant 0 : index
    %c0_0 = arith.constant 0 : index
    %0 = vector.load %arg2[%c0, %c0_0] : memref<64x128xbf16, #tpu.memory_space<vmem>>, vector<64x128xbf16>
    %c0_1 = arith.constant 0 : index
    %c0_2 = arith.constant 0 : index
    %1 = vector.load %arg3[%c0_1, %c0_2] : memref<128x128xbf16, #tpu.memory_space<vmem>>, vector<128x128xbf16>
    %cst = arith.constant dense<0.000000e+00> : vector<64x128xf32>
    %2 = tpu.matmul %0, %1, %cst {dimension_numbers = #tpu.dot_dimension_numbers<[1], [0], [0], [1], [0, 0, 1, 1], [], []>} : vector<64x128xbf16>, vector<128x128xbf16>, vector<64x128xf32> -> vector<64x128xf32>
    %cst_3 = arith.constant 0.000000e+00 : f32
    %3 = vector.broadcast %cst_3 : f32 to vector<64x128xf32>
    %4 = arith.cmpf ogt, %2, %3 : vector<64x128xf32>
    %cst_4 = arith.constant 2.000000e-01 : f32
    %5 = vector.broadcast %cst_4 : f32 to vector<64x128xf32>
    %6 = arith.mulf %5, %2 : vector<64x128xf32>
    %7 = arith.select %4, %2, %6 : vector<64x128xi1>, vector<64x128xf32>
    %8 = arith.truncf %7 : vector<64x128xf32> to vector<64x128xbf16>
    %c0_5 = arith.constant 0 : index
    %c0_6 = arith.constant 0 : index
    %9 = vector.load %arg4[%c0_5, %c0_6] : memref<64x128xbf16, #tpu.memory_space<vmem>>, vector<64x128xbf16>
    tpu.vector_store %arg4[%c0_5, %c0_6], %8 {strides = array<i32>} : memref<64x128xbf16, #tpu.memory_space<vmem>>, vector<64x128xbf16>,
    return
  }
  func.func @transform_0(%arg0: i32, %arg1: i32) -> (i32, i32) {
    %c0_i32 = arith.constant 0 : i32
    %c0_i32_0 = arith.constant 0 : i32
    return %arg0, %c0_i32 : i32, i32
  }
  func.func @transform_1(%arg0: i32, %arg1: i32) -> (i32, i32) {
    %c0_i32 = arith.constant 0 : i32
    %c0_i32_0 = arith.constant 0 : i32
    return %c0_i32, %arg1 : i32, i32
  }
  func.func @transform_2(%arg0: i32, %arg1: i32) -> (i32, i32) {
    %c0_i32 = arith.constant 0 : i32
    return %arg0, %arg1 : i32, i32
  }
}

module attributes {stable_mosaic.version = 11 : i64} {
  func.func @_conv_lrelu_kernel(%arg0: i32, %arg1: i32, %arg2: memref<16x128xbf16, #tpu.memory_space<vmem>>, %arg3: memref<128x128xbf16, #tpu.memory_space<vmem>>, %arg4: memref<16x128xbf16, #tpu.memory_space<vmem>>) attributes {dimension_semantics = [#tpu.dimension_semantics<parallel>, #tpu.dimension_semantics<parallel>], iteration_bounds = array<i64: 2, 1>, scalar_prefetch = 0 : i64, scratch_operands = 0 : i64, tpu.core_type = #tpu.core_type<tc>, window_params = [{transform_indices = @transform_0, window_bounds = array<i64: 16, 128>}, {transform_indices = @transform_1, window_bounds = array<i64: 128, 128>}, {transform_indices = @transform_2, window_bounds = array<i64: 16, 128>}]} {
    %c0 = arith.constant 0 : index
    %c0_0 = arith.constant 0 : index
    %0 = vector.load %arg2[%c0, %c0_0] : memref<16x128xbf16, #tpu.memory_space<vmem>>, vector<16x128xbf16>
    %c0_1 = arith.constant 0 : index
    %c0_2 = arith.constant 0 : index
    %1 = vector.load %arg3[%c0_1, %c0_2] : memref<128x128xbf16, #tpu.memory_space<vmem>>, vector<128x128xbf16>
    %cst = arith.constant dense<0.000000e+00> : vector<16x128xf32>
    %2 = tpu.matmul %0, %1, %cst {dimension_numbers = #tpu.dot_dimension_numbers<[1], [0], [0], [1], [0, 0, 1, 1], [], []>} : vector<16x128xbf16>, vector<128x128xbf16>, vector<16x128xf32> -> vector<16x128xf32>
    %cst_3 = arith.constant 0.000000e+00 : f32
    %3 = vector.broadcast %cst_3 : f32 to vector<16x128xf32>
    %4 = arith.cmpf ogt, %2, %3 : vector<16x128xf32>
    %cst_4 = arith.constant 2.000000e-01 : f32
    %5 = vector.broadcast %cst_4 : f32 to vector<16x128xf32>
    %6 = arith.mulf %5, %2 : vector<16x128xf32>
    %7 = arith.select %4, %2, %6 : vector<16x128xi1>, vector<16x128xf32>
    %8 = arith.truncf %7 : vector<16x128xf32> to vector<16x128xbf16>
    %c0_5 = arith.constant 0 : index
    %c0_6 = arith.constant 0 : index
    %9 = vector.load %arg4[%c0_5, %c0_6] : memref<16x128xbf16, #tpu.memory_space<vmem>>, vector<16x128xbf16>
    tpu.vector_store %arg4[%c0_5, %c0_6], %8 {strides = array<i32>} : memref<16x128xbf16, #tpu.memory_space<vmem>>, vector<16x128xbf16>,
    return
  }
  func.func @transform_0(%arg0: i32, %arg1: i32) -> (i32, i32) {
    %c0_i32 = arith.constant 0 : i32
    %c0_i32_0 = arith.constant 0 : i32
    return %arg0, %c0_i32 : i32, i32
  }
  func.func @transform_1(%arg0: i32, %arg1: i32) -> (i32, i32) {
    %c0_i32 = arith.constant 0 : i32
    %c0_i32_0 = arith.constant 0 : i32
    return %c0_i32, %arg1 : i32, i32
  }
  func.func @transform_2(%arg0: i32, %arg1: i32) -> (i32, i32) {
    %c0_i32 = arith.constant 0 : i32
    return %arg0, %arg1 : i32, i32
  }
}

module attributes {stable_mosaic.version = 11 : i64} {
  func.func @_final_conv_mean_kernel(%arg0: i32, %arg1: memref<1xf32, #tpu.memory_space<smem>>, %arg2: memref<16x256xbf16, #tpu.memory_space<vmem>>, %arg3: memref<256x128xbf16, #tpu.memory_space<vmem>>, %arg4: memref<1x128xf32, #tpu.memory_space<vmem>>, %arg5: memref<1x128xf32, #tpu.memory_space<vmem>>) attributes {dimension_semantics = [#tpu.dimension_semantics<arbitrary>], iteration_bounds = array<i64: 1>, scalar_prefetch = 0 : i64, scratch_operands = 1 : i64, tpu.core_type = #tpu.core_type<tc>, window_params = [{transform_indices = @transform_0, window_bounds = array<i64: 1>}, {transform_indices = @transform_1, window_bounds = array<i64: 16, 256>}, {pipeline_mode = #tpu.pipeline_mode<synchronous>, transform_indices = @transform_2, window_bounds = array<i64: 256, 128>}, {pipeline_mode = #tpu.pipeline_mode<synchronous>, transform_indices = @transform_3, window_bounds = array<i64: 1, 128>}]} {
    %c0_i32 = arith.constant 0 : i32
    %0 = arith.cmpi eq, %arg0, %c0_i32 : i32
    %1 = arith.extui %0 : i1 to i32
    %c0_i32_0 = arith.constant 0 : i32
    %2 = arith.cmpi ne, %1, %c0_i32_0 : i32
    scf.if %2 {
      %cst_11 = arith.constant 0.000000e+00 : f32
      %14 = vector.broadcast %cst_11 : f32 to vector<1x128xf32>
      %c0_12 = arith.constant 0 : index
      %c0_13 = arith.constant 0 : index
      %15 = vector.load %arg5[%c0_12, %c0_13] : memref<1x128xf32, #tpu.memory_space<vmem>>, vector<1x128xf32>
      tpu.vector_store %arg5[%c0_12, %c0_13], %14 {strides = array<i32>} : memref<1x128xf32, #tpu.memory_space<vmem>>, vector<1x128xf32>,
    } else {
    }
    %c0 = arith.constant 0 : index
    %c0_1 = arith.constant 0 : index
    %3 = vector.load %arg2[%c0, %c0_1] : memref<16x256xbf16, #tpu.memory_space<vmem>>, vector<16x256xbf16>
    %c0_2 = arith.constant 0 : index
    %c0_3 = arith.constant 0 : index
    %4 = vector.load %arg3[%c0_2, %c0_3] : memref<256x128xbf16, #tpu.memory_space<vmem>>, vector<256x128xbf16>
    %cst = arith.constant dense<0.000000e+00> : vector<16x128xf32>
    %5 = tpu.matmul %3, %4, %cst {dimension_numbers = #tpu.dot_dimension_numbers<[1], [0], [0], [1], [0, 0, 1, 1], [], []>} : vector<16x256xbf16>, vector<256x128xbf16>, vector<16x128xf32> -> vector<16x128xf32>
    %c0_4 = arith.constant 0 : index
    %c0_5 = arith.constant 0 : index
    %6 = vector.load %arg5[%c0_4, %c0_5] : memref<1x128xf32, #tpu.memory_space<vmem>>, vector<1x128xf32>
    %cst_6 = arith.constant dense<0.000000e+00> : vector<128xf32>
    %7 = vector.multi_reduction <add>, %5, %cst_6 [0] : vector<16x128xf32> to vector<128xf32>
    %8 = vector.shape_cast %7 : vector<128xf32> to vector<1x128xf32>
    %9 = arith.addf %6, %8 : vector<1x128xf32>
    %c0_7 = arith.constant 0 : index
    %c0_8 = arith.constant 0 : index
    %10 = vector.load %arg5[%c0_7, %c0_8] : memref<1x128xf32, #tpu.memory_space<vmem>>, vector<1x128xf32>
    tpu.vector_store %arg5[%c0_7, %c0_8], %9 {strides = array<i32>} : memref<1x128xf32, #tpu.memory_space<vmem>>, vector<1x128xf32>,
    %c0_i32_9 = arith.constant 0 : i32
    %11 = arith.cmpi eq, %arg0, %c0_i32_9 : i32
    %12 = arith.extui %11 : i1 to i32
    %c0_i32_10 = arith.constant 0 : i32
    %13 = arith.cmpi ne, %12, %c0_i32_10 : i32
    scf.if %13 {
      %c0_11 = arith.constant 0 : index
      %c0_12 = arith.constant 0 : index
      %14 = vector.load %arg5[%c0_11, %c0_12] : memref<1x128xf32, #tpu.memory_space<vmem>>, vector<1x128xf32>
      %c0_13 = arith.constant 0 : index
      %15 = memref.load %arg1[%c0_13] : memref<1xf32, #tpu.memory_space<smem>>
      %16 = vector.broadcast %15 : f32 to vector<1x128xf32>
      %17 = arith.mulf %14, %16 : vector<1x128xf32>
      %c0_14 = arith.constant 0 : index
      %c0_15 = arith.constant 0 : index
      %18 = vector.load %arg4[%c0_14, %c0_15] : memref<1x128xf32, #tpu.memory_space<vmem>>, vector<1x128xf32>
      tpu.vector_store %arg4[%c0_14, %c0_15], %17 {strides = array<i32>} : memref<1x128xf32, #tpu.memory_space<vmem>>, vector<1x128xf32>,
    } else {
    }
    return
  }
  func.func @transform_0(%arg0: i32) -> i32 {
    %c0_i32 = arith.constant 0 : i32
    %c0_i32_0 = arith.constant 0 : i32
    return %c0_i32 : i32
  }
  func.func @transform_1(%arg0: i32) -> (i32, i32) {
    %c0_i32 = arith.constant 0 : i32
    %c0_i32_0 = arith.constant 0 : i32
    return %arg0, %c0_i32 : i32, i32
  }
  func.func @transform_2(%arg0: i32) -> (i32, i32) {
    %c0_i32 = arith.constant 0 : i32
    %c0_i32_0 = arith.constant 0 : i32
    %c0_i32_1 = arith.constant 0 : i32
    return %c0_i32, %c0_i32_0 : i32, i32
  }
  func.func @transform_3(%arg0: i32) -> (i32, i32) {
    %c0_i32 = arith.constant 0 : i32
    %c0_i32_0 = arith.constant 0 : i32
    %c0_i32_1 = arith.constant 0 : i32
    return %c0_i32, %c0_i32_0 : i32, i32
  }
}

</mosaic_0001>

<bundles_post_ra>
// kernel: d_forward.3
= control target key start
LH: loop header
LB: loop body
LE: loop exit
PB: predicated region body
PF: predicated region fallthrough
CT: control target
= control target key end

     0   :  { %s690_s9 = smov 0   ;;  %s692_s10 = smov 0   ;;  %s760_s0 = inlined_call_operand.vmem [shape: bf16[128,128], index: 0, kind: input, shape index: {}]   ;;  %s761_s1 = inlined_call_operand.vmem [shape: bf16[128,128], index: 1, kind: input, shape index: {}]   ;;  %s762_s2 = inlined_call_operand.vmem [shape: bf16[128,128], index: 2, kind: output, shape index: {}]  }
   0x1   :  { %s694_s11 = smov 0  }
   0x2 LB: > { %s24_s12 = sadd.s32 1, %s669_s10  ;;  %p505_p0 = scmp.ge.s32.totalorder %s673_s11, 1  ;;  %s673_s11 = sphi %s694_s11, %s12_s11   ;;  %s669_s10 = sphi %s692_s10, %s764_s10   ;;  %s665_s9 = sphi %s690_s9, %s763_s9  }
   0x3   : > { %p26_p1 = scmp.ge.s32.totalorder %s24_s12, 2  ;;  %p136_p2 = scmp.lt.s32.totalorder %s673_s11, 3 }
   0x5   : > { %s766_s12 = smov (%p26_p1, %s24_s12), 0  ;;  %p137_p3 = pnand %p505_p0, %p136_p2 }
   0x6   : > { %v639_v0 = vld [vmem:[%s761_s1] sm:$0xff] (!%p137_p3)   ;;  %s506_s15 = sshll.u32 (!%p137_p3), %s665_s9, 3  ;;  %v640_v1 = vld [vmem:[%s761_s1 + $0x8] sm:$0xff] (!%p137_p3)   ;;  %v641_v2 = vld [vmem:[%s761_s1 + $0x10] sm:$0xff] (!%p137_p3)  }
   0x7   : > { %140 = sbr.rel (%p137_p3) target bundleno = 262 (0x106), region = 28  ;;  %p166_p4 = scmp.lt.s32.totalorder (!%p137_p3), %s506_s15, 15  ;;  %575 = vmatprep.subr.bf16.mxu0 (!%p137_p3), %v639_v0  ;;  %599 = vmatprep.subr.bf16.mxu1 (!%p137_p3), %v639_v0  ;;  %v642_v3 = vld [vmem:[%s761_s1 + $0x18] sm:$0xff] (!%p137_p3)   ;;  %v643_v6 = vld [vmem:[%s761_s1 + $0x20] sm:$0xff] (!%p137_p3)   ;;  %v644_v7 = vld [vmem:[%s761_s1 + $0x28] sm:$0xff] (!%p137_p3)  }
   0x8   : > { %576 = vmatpush3.bf16.msra.mxu0 (!%p137_p3), %v639_v0  ;;  %607 = vmatpush3.bf16.msra.mxu1 (!%p137_p3), %v639_v0  ;;  %v645_v8 = vld [vmem:[%s761_s1 + $0x30] sm:$0xff] (!%p137_p3)   ;;  %v646_v9 = vld [vmem:[%s761_s1 + $0x38] sm:$0xff] (!%p137_p3)  }
   0x9   : > { %577 = vmatprep.subr.bf16.mxu0 (!%p137_p3), %v640_v1  ;;  %600 = vmatprep.subr.bf16.mxu1 (!%p137_p3), %v640_v1 }
   0xc   : > { %578 = vmatpush3.bf16.msra.mxu0 (!%p137_p3), %v640_v1  ;;  %608 = vmatpush3.bf16.msra.mxu1 (!%p137_p3), %v640_v1 }
   0xd   : > { %579 = vmatprep.subr.bf16.mxu0 (!%p137_p3), %v641_v2  ;;  %601 = vmatprep.subr.bf16.mxu1 (!%p137_p3), %v641_v2 }
   0xe   : > { %s768_s15 = smov (!%p166_p4, %s506_s15), 15 }
   0xf   : > { %s507_s20 = sshll.u32 %s768_s15, 2 }
  0x10   : > { %s725_s23 = scalar_lea.vmem %s760_s0, %s507_s20  ;;  %580 = vmatpush3.bf16.msra.mxu0 %v641_v2  ;;  %609 = vmatpush3.bf16.msra.mxu1 %v641_v2  ;;  %s182_s8 = scalar_lea.vmem %s762_s2, %s507_s20 }
  0x11   : > { %v647_v4 = vld [vmem:[%s725_s23] sm:$0xff]   ;;  %v648_v5 = vld [vmem:[%s725_s23 + $0x10] sm:$0xff]   ;;  %581 = vmatprep.subr.bf16.mxu0 %v642_v3  ;;  %602 = vmatprep.subr.bf16.mxu1 %v642_v3  ;;  %v649_v10 = vld [vmem:[%s725_s23 + $0x8] sm:$0xff]  }
  0x12   : > { %591 = vmatprep.mubr.bf16.mxu0 %v647_v4  ;;  %595 = vmatprep.mubr.bf16.mxu1 %v648_v5  ;;  %v650_v11 = vld [vmem:[%s725_s23 + $0x18] sm:$0xff]  }
  0x14   : > { %582 = vmatpush3.bf16.msra.mxu0 %v642_v3  ;;  %610 = vmatpush3.bf16.msra.mxu1 %v642_v3 }
  0x15   : > { %583 = vmatprep.subr.bf16.mxu0 %v643_v6  ;;  %603 = vmatprep.subr.bf16.mxu1 %v643_v6 }
  0x18   : > { %584 = vmatpush3.bf16.msra.mxu0 %v643_v6  ;;  %611 = vmatpush3.bf16.msra.mxu1 %v643_v6 }
  0x19   : > { %585 = vmatprep.subr.bf16.mxu0 %v644_v7  ;;  %604 = vmatprep.subr.bf16.mxu1 %v644_v7 }
  0x1c   : > { %586 = vmatpush3.bf16.msra.mxu0 %v644_v7  ;;  %612 = vmatpush3.bf16.msra.mxu1 %v644_v7 }
  0x1d   : > { %587 = vmatprep.subr.bf16.mxu0 %v645_v8  ;;  %605 = vmatprep.subr.bf16.mxu1 %v645_v8 }
  0x20   : > { %588 = vmatpush3.bf16.msra.mxu0 %v645_v8  ;;  %613 = vmatpush3.bf16.msra.mxu1 %v645_v8 }
  0x21   : > { %589 = vmatprep.subr.bf16.mxu0 %v646_v9  ;;  %606 = vmatprep.subr.bf16.mxu1 %v646_v9 }
  0x24   : > { %590 = vmatpush3.bf16.msra.mxu0 %v646_v9  ;;  %614 = vmatpush3.bf16.msra.mxu1 %v646_v9 }
  0x27   : > { %592 = vmatmul.mubr.bf16.vlgmr.msra.gmra.mrb[0].mxu0 %v649_v10  ;;  %596 = vmatmul.mubr.bf16.vlgmr.msra.gmra.mrb[0].mxu1 %v650_v11 }
  0xfa   : > { %v593_v12 = vpop.f32.mrb[0].mxu0  ;;  %v597_v13 = vpop.f32.mrb[0].mxu1 }
  0xfb   : > { %vm348_vm0 = vcmp.gt.f32.partialorder %v593_v12, 0.0  ;;  %v356_v14 = vmul.f32 0.2, %v593_v12  ;;  %v360_v15 = vmul.f32 0.2, %v597_v13  ;;  %vm352_vm1 = vcmp.gt.f32.partialorder %v597_v13, 0.0 }
  0xfc   : > { %v315_v16 = vpop.f32.mrb[1].mxu0  ;;  %v331_v17 = vpop.f32.mrb[1].mxu1 }
  0xfd   : > { %v354_v18 = vmul.f32 0.2, %v315_v16  ;;  %v594_v19 = vpop.f32.mrb[2].mxu0  ;;  %v598_v20 = vpop.f32.mrb[2].mxu1  ;;  %v364_v21 = vsel %vm348_vm0, %v593_v12, %v356_v14  ;;  %v358_v22 = vmul.f32 0.2, %v331_v17  ;;  %v368_v24 = vsel %vm352_vm1, %v597_v13, %v360_v15 }
  0xfe   : > { %vm349_vm2 = vcmp.gt.f32.partialorder %v594_v19, 0.0  ;;  %v357_v23 = vmul.f32 0.2, %v594_v19  ;;  %vm346_vm3 = vcmp.gt.f32.partialorder %v315_v16, 0.0  ;;  %vm353_vm4 = vcmp.gt.f32.partialorder %v598_v20, 0.0  ;;  %v318_v26 = vpop.f32.mrb[3].mxu0 }
  0xff   : > { %v361_v25 = vmul.f32 0.2, %v598_v20  ;;  %v334_v27 = vpop.f32.mrb[3].mxu1  ;;  %vm350_vm5 = vcmp.gt.f32.partialorder %v331_v17, 0.0  ;;  %vm347_vm6 = vcmp.gt.f32.partialorder %v318_v26, 0.0  ;;  %v362_v33 = vsel %vm346_vm3, %v315_v16, %v354_v18 }
 0x100   : > { %v365_v28 = vsel %vm349_vm2, %v594_v19, %v357_v23  ;;  %v355_v29 = vmul.f32 0.2, %v318_v26  ;;  %vm351_vm7 = vcmp.gt.f32.partialorder %v334_v27, 0.0  ;;  %v359_v32 = vmul.f32 0.2, %v334_v27 }
 0x101   : > { %v548_v30 = vpack.c.bf16 %v365_v28, %v364_v21  ;;  %v369_v31 = vsel %vm353_vm4, %v598_v20, %v361_v25  ;;  %v366_v36 = vsel %vm350_vm5, %v331_v17, %v358_v22 }
 0x102   : > { %v558_v34 = vpack.c.bf16 %v369_v31, %v368_v24  ;;  %v363_v35 = vsel %vm347_vm6, %v318_v26, %v355_v29  ;;  %v367_v38 = vsel %vm351_vm7, %v334_v27, %v359_v32 }
 0x103   : > { %560 = vst [vmem:[%s182_s8 + $0x8] sm:$0xff] %v548_v30   ;;  %v543_v37 = vpack.c.bf16 %v363_v35, %v362_v33  ;;  %v553_v39 = vpack.c.bf16 %v367_v38, %v366_v36 }
 0x104   : > { %562 = vst [vmem:[%s182_s8 + $0x18] sm:$0xff] %v558_v34  }
 0x105   : > { %544 = vst [vmem:[%s182_s8] sm:$0xff] %v543_v37   ;;  %561 = vst [vmem:[%s182_s8 + $0x10] sm:$0xff] %v553_v39  }
 0x106 PF: > { %s12_s11 = sadd.s32 1, %s673_s11   ;;  %s763_s9 = smov %s669_s10 }
 0x107   : > { %p9_p5 = scmp.ge.s32.totalorder %s12_s11, 4   ;;  %s764_s10 = smov %s766_s12 }
 0x109   :  { %11 = sbr.rel (!%p9_p5) target bundleno = 2 (0x2), region = 61 }

// kernel: d_forward.4
= control target key start
LH: loop header
LB: loop body
LE: loop exit
PB: predicated region body
PF: predicated region fallthrough
CT: control target
= control target key end

     0   :  { %s539_s9 = smov 0   ;;  %s541_s10 = smov 0   ;;  %s603_s0 = inlined_call_operand.vmem [shape: bf16[32,128], index: 0, kind: input, shape index: {}]   ;;  %s604_s1 = inlined_call_operand.vmem [shape: bf16[128,128], index: 1, kind: input, shape index: {}]   ;;  %s605_s2 = inlined_call_operand.vmem [shape: bf16[32,128], index: 2, kind: output, shape index: {}]  }
   0x1   :  { %s543_s11 = smov 0  }
   0x2 LB: > { %s24_s12 = sadd.s32 1, %s516_s10  ;;  %p409_p0 = scmp.ge.s32.totalorder %s520_s11, 1  ;;  %s520_s11 = sphi %s543_s11, %s12_s11   ;;  %s516_s10 = sphi %s541_s10, %s607_s10   ;;  %s512_s9 = sphi %s539_s9, %s606_s9  }
   0x3   : > { %p26_p1 = scmp.ge.s32.totalorder %s24_s12, 2  ;;  %p136_p2 = scmp.lt.s32.totalorder %s520_s11, 3 }
   0x5   : > { %s609_s12 = smov (%p26_p1, %s24_s12), 0  ;;  %p137_p3 = pnand %p409_p0, %p136_p2 }
   0x6   : > { %v489_v0 = vld [vmem:[%s604_s1] sm:$0xff] (!%p137_p3)   ;;  %v522_v1 = vmov (!%p137_p3), 0.0   ;;  %v490_v2 = vld [vmem:[%s604_s1 + $0x8] sm:$0xff] (!%p137_p3)   ;;  %vm523_vm0 = vmmov (!%p137_p3), 0   ;;  %s410_s17 = sshll.u32 (!%p137_p3), %s512_s9, 1  ;;  %v491_v3 = vld [vmem:[%s604_s1 + $0x10] sm:$0xff] (!%p137_p3)  }
   0x7   : > { %140 = sbr.rel (%p137_p3) target bundleno = 259 (0x103), region = 28  ;;  %443 = vmatprep.subr.bf16.mxu0 (!%p137_p3), %v522_v1  ;;  %459 = vmatprep.mubr.msk.bf16.mxu0 (!%p137_p3), %vm523_vm0, %v522_v1  ;;  %p166_p4 = scmp.lt.s32.totalorder (!%p137_p3), %s410_s17, 3  ;;  %v492_v4 = vld [vmem:[%s604_s1 + $0x18] sm:$0xff] (!%p137_p3)   ;;  %v493_v5 = vld [vmem:[%s604_s1 + $0x20] sm:$0xff] (!%p137_p3)   ;;  %v494_v6 = vld [vmem:[%s604_s1 + $0x28] sm:$0xff] (!%p137_p3)  }
   0x8   : > { %444 = vmatpush3.bf16.msra.mxu0 (!%p137_p3), %v489_v0  ;;  %v495_v7 = vld [vmem:[%s604_s1 + $0x30] sm:$0xff] (!%p137_p3)   ;;  %v496_v8 = vld [vmem:[%s604_s1 + $0x38] sm:$0xff] (!%p137_p3)  }
   0x9   : > { %445 = vmatprep.subr.bf16.mxu0 (!%p137_p3), %v522_v1 }
   0xc   : > { %446 = vmatpush3.bf16.msra.mxu0 (!%p137_p3), %v490_v2 }
   0xd   : > { %447 = vmatprep.subr.bf16.mxu0 (!%p137_p3), %v522_v1 }
   0xe   : > { %s611_s17 = smov (!%p166_p4, %s410_s17), 3 }
   0xf   : > { %s411_s20 = sshll.u32 %s611_s17, 2 }
  0x10   : > { %s169_s23 = scalar_lea.vmem %s603_s0, %s411_s20  ;;  %448 = vmatpush3.bf16.msra.mxu0 %v491_v3  ;;  %s182_s8 = scalar_lea.vmem %s605_s2, %s411_s20 }
  0x11   : > { %449 = vmatprep.subr.bf16.mxu0 %v522_v1  ;;  %v497_v9 = vld [vmem:[%s169_s23] sm:$0xff]  }
  0x14   : > { %450 = vmatpush3.bf16.msra.mxu0 %v492_v4 }
  0x15   : > { %451 = vmatprep.subr.bf16.mxu0 %v522_v1 }
  0x18   : > { %452 = vmatpush3.bf16.msra.mxu0 %v493_v5 }
  0x19   : > { %453 = vmatprep.subr.bf16.mxu0 %v522_v1 }
  0x1c   : > { %454 = vmatpush3.bf16.msra.mxu0 %v494_v6 }
  0x1d   : > { %455 = vmatprep.subr.bf16.mxu0 %v522_v1 }
  0x20   : > { %456 = vmatpush3.bf16.msra.mxu0 %v495_v7 }
  0x21   : > { %457 = vmatprep.subr.bf16.mxu0 %v522_v1 }
  0x24   : > { %458 = vmatpush3.bf16.msra.mxu0 %v496_v8 }
  0x27   : > { %460 = vmatmul.mubr.bf16.vlgmr.msra.gmra.mrb[0].mxu0 %v497_v9 }
  0xfa   : > { %v291_v10 = vpop.f32.mrb[0].mxu0 }
  0xfb   : > { %v300_v11 = vmul.f32 0.2, %v291_v10  ;;  %v461_v12 = vpop.f32.mrb[1].mxu0  ;;  %vm298_vm1 = vcmp.gt.f32.partialorder %v291_v10, 0.0 }
  0xfc   : > { %v294_v13 = vpop.f32.mrb[2].mxu0 }
  0xfd   : > { %vm299_vm2 = vcmp.gt.f32.partialorder %v294_v13, 0.0  ;;  %v301_v14 = vmul.f32 0.2, %v294_v13  ;;  %v462_v15 = vpop.f32.mrb[3].mxu0  ;;  %v302_v16 = vsel %vm298_vm1, %v291_v10, %v300_v11 }
  0xff   : > { %v303_v17 = vsel %vm299_vm2, %v294_v13, %v301_v14 }
 0x100   : > { %v432_v18 = vpack.c.bf16 %v303_v17, %v302_v16 }
 0x102   : > { %433 = vst [vmem:[%s182_s8] sm:$0xff] %v432_v18  }
 0x103 PF: > { %s12_s11 = sadd.s32 1, %s520_s11   ;;  %s606_s9 = smov %s516_s10 }
 0x104   : > { %p9_p5 = scmp.ge.s32.totalorder %s12_s11, 4   ;;  %s607_s10 = smov %s609_s12 }
 0x106   :  { %11 = sbr.rel (!%p9_p5) target bundleno = 2 (0x2), region = 61 }

// kernel: d_forward.5
= control target key start
LH: loop header
LB: loop body
LE: loop exit
PB: predicated region body
PF: predicated region fallthrough
CT: control target
= control target key end

     0   :  { %s411_s0 = inlined_call_operand.<no memory space> [shape: f32[1], index: 0, kind: input, shape index: {}]   ;;  %s412_s1 = inlined_call_operand.vmem [shape: bf16[16,256], index: 1, kind: input, shape index: {}]   ;;  %s413_s2 = inlined_call_operand.vmem [shape: bf16[256,128], index: 2, kind: input, shape index: {}]   ;;  %s414_s3 = inlined_call_operand.hbm [shape: f32[1,128], index: 3, kind: output, shape index: {}]  }
   0x1   :  { %v277_v0 = vld [vmem:[%s413_s2 + $0x40] sm:$0xff]   ;;  %v279_v2 = vld [vmem:[%s413_s2 + $0x48] sm:$0xff]   ;;  %v281_v4 = vld [vmem:[%s413_s2 + $0x50] sm:$0xff]  }
   0x2   :  { %v278_v1 = vld [vmem:[%s413_s2] sm:$0xff]   ;;  %253 = vmatprep.subr.bf16.mxu0 %v277_v0  ;;  %v280_v3 = vld [vmem:[%s413_s2 + $0x8] sm:$0xff]   ;;  %v282_v5 = vld [vmem:[%s413_s2 + $0x10] sm:$0xff]  }
   0x3   :  { %254 = vmatpush3.bf16.msra.mxu0 %v278_v1  ;;  %v283_v6 = vld [vmem:[%s413_s2 + $0x58] sm:$0xff]   ;;  %v285_v8 = vld [vmem:[%s413_s2 + $0x60] sm:$0xff]   ;;  %v287_v10 = vld [vmem:[%s413_s2 + $0x68] sm:$0xff]  }
   0x4   :  { %255 = vmatprep.subr.bf16.mxu0 %v279_v2  ;;  %v284_v7 = vld [vmem:[%s413_s2 + $0x18] sm:$0xff]   ;;  %v286_v9 = vld [vmem:[%s413_s2 + $0x20] sm:$0xff]  }
   0x5   :  { %v295_v11 = vld [vmem:[%s412_s1 + $0x4] ss:$8 sps:$4 sm:$0xff]  }
   0x7   :  { %256 = vmatpush3.bf16.msra.mxu0 %v280_v3 }
   0x8   :  { %257 = vmatprep.subr.bf16.mxu0 %v281_v4 }
   0xb   :  { %258 = vmatpush3.bf16.msra.mxu0 %v282_v5 }
   0xc   :  { %259 = vmatprep.subr.bf16.mxu0 %v283_v6 }
   0xf   :  { %260 = vmatpush3.bf16.msra.mxu0 %v284_v7 }
  0x10   :  { %261 = vmatprep.subr.bf16.mxu0 %v285_v8 }
  0x11   :  { %9 = vsyncpa [#allocation5], 0  ;;  %v288_v12 = vld [vmem:[%s413_s2 + $0x28] sm:$0xff]   ;;  %194 = vmatprep.mubr.bf16.mxu0 %v295_v11  ;;  %v289_v13 = vld [vmem:[%s413_s2 + $0x70] sm:$0xff]   ;;  %v320_v18 = vmov 0.0   ;;  %v218_v34 = vstv %s411_s0  ;;  %s321_s21 = smov [#allocation4]  }
  0x12   :  { %v290_v14 = vld [vmem:[%s413_s2 + $0x30] sm:$0xff]   ;;  %v291_v15 = vld [vmem:[%s413_s2 + $0x78] sm:$0xff]   ;;  %v293_v17 = vld [vmem:[%s412_s1] ss:$8 sps:$4 sm:$0xff]   ;;  %21 = vst [vmem:[#allocation2] sm:$0x1] %v320_v18 }
  0x13   :  { %262 = vmatpush3.bf16.msra.mxu0 %v286_v9  ;;  %v292_v16 = vld [vmem:[%s413_s2 + $0x38] sm:$0xff]   ;;  %s227_s22 = sshll.u32 %s321_s21, 4  ;;  %s228_s22 = int_to_ptr.vmem [resolvable:$true] %s227_s22 }
  0x14   :  { %263 = vmatprep.subr.bf16.mxu0 %v287_v10  ;;  %s296_s23 = scalar_lea.vmem %s228_s22, 16  ;;  %s300_s24 = scalar_lea.vmem %s228_s22, 32 }
  0x15   :  { %p297_p0 = scmp.ne.s32.totalorder %s228_s22, %s296_s23  ;;  %p301_p1 = scmp.lt.s32.totalorder %s228_s22, %s228_s22 }
  0x16   :  { %p302_p2 = scmp.lt.s32.totalorder %s300_s24, %s296_s23 }
  0x17   :  { %264 = vmatpush3.bf16.msra.mxu0 %v288_v12 }
  0x18   :  { %265 = vmatprep.subr.bf16.mxu0 %v289_v13  ;;  %p303_p3 = por %p302_p2, %p301_p1 }
  0x19   :  { %v203_v31 = vld [vmem:[#allocation2] sm:$0x1] }
  0x1a   :  { %p304_p4 = pnand %p303_p3, %p297_p0 }
  0x1b   :  { %266 = vmatpush3.bf16.msra.mxu0 %v290_v14 }
  0x1c   :  { %267 = vmatprep.subr.bf16.mxu0 %v291_v15 }
  0x1f   :  { %268 = vmatpush3.bf16.msra.mxu0 %v292_v16 }
  0x22   :  { %195 = vmatmul.mubr.bf16.vlgmr.msra.gmra.mrb[0].mxu0 %v293_v17 }
  0xf5   :  { %v269_v19 = vpop.f32.mrb[0].mxu0 }
  0xf6   :  { %v270_v20 = vpop.f32.mrb[1].mxu0 }
  0xf7   :  { %v271_v21 = vadd.f32 %v270_v20, %v269_v19  ;;  %v272_v22 = vpop.f32.mrb[2].mxu0 }
  0xf8   :  { %v273_v23 = vpop.f32.mrb[3].mxu0 }
  0xf9   :  { %v274_v24 = vadd.f32 %v273_v23, %v272_v22 }
  0xfb   :  { %v204_v25 = vadd.f32 %v274_v24, %v271_v21 }
  0xfd   :  { %v205_v26 = vrot.slane %v204_v25, 4 }
  0xff   :  { %v206_v27 = vadd.f32 %v205_v26, %v204_v25 }
 0x101   :  { %v207_v28 = vrot.slane %v206_v27, 2 }
 0x103   :  { %v208_v29 = vadd.f32 %v207_v28, %v206_v27 }
 0x105   :  { %v209_v30 = vrot.slane %v208_v29, 1 }
 0x107   :  { %v210_v32 = vadd.f32 %v209_v30, %v208_v29 }
 0x109   :  { %v211_v33 = vadd.f32 %v210_v32, %v203_v31 }
 0x10b   :  { %212 = vst [vmem:[#allocation2] sm:$0x1] %v211_v33 }
 0x112   :  { %v216_v35 = vld [vmem:[#allocation2] sm:$0x1] }
 0x113   :  { %v219_v36 = vmul.f32 %v218_v34, %v216_v35 }
 0x115   :  { %220 = vst [vmem:[#allocation4] sm:$0x1] %v219_v36 }
 0x116   :  { %307 = shalt.err (!%p304_p4)
}
 0x117   :  { %s308_s27 = scalar_lea.hbm %s414_s3, 16 }
 0x118   :  { %p309_p5 = scmp.ne.s32.totalorder %s414_s3, %s308_s27  ;;  %p312_p6 = scmp.lt.u32.totalorder %s308_s27, %s414_s3 }
 0x11a   :  { %p314_p7 = pnand %p312_p6, %p309_p5 }
 0x11c   :  { %317 = shalt.err (!%p314_p7)
}
 0x11d   :  { %230 = dma.vmem_to_hbm [thread:$0]  %s228_s22, 16, %s414_s3, [#allocation5]  }
 0x11e   :  { %318 = dma.done.wait [#allocation5], 16  }
 0x11f   :  { %319 = vsyncadd [#allocation5], 4294967280 }
 0x120   :  { %234 = vsyncpa [#allocation5], 1 }

</bundles_post_ra>
